<compile_context>
chip_gen: v7x
topology: tpu7x:2x2x1
jax: 0.10.0
libtpu: 0.0.40
codegen_flags: <defaults>
</compile_context>

<pallas_src>
import functools

import jax
import jax.numpy as jnp
from jax.experimental import pallas as pl
from jax.experimental.pallas import tpu as pltpu

EPS = 1e-5


# --------------------------------------------------------------------------- #
# Helpers
# --------------------------------------------------------------------------- #
def _vmem_limit():
    """Generation-aware VMEM limit (bytes) for CompilerParams."""
    cap = None
    try:
        cap = int(pltpu.get_tpu_info().vmem_capacity_bytes)
    except Exception:
        cap = None
    if not cap or cap <= 0:
        cap = 64 * 1024 * 1024  # conservative (v7x-sized) fallback
    if cap >= 96 * 1024 * 1024:   # v5e / v6e (128 MiB physical)
        return int(cap * 0.85)
    return int(cap * 0.70)        # v7x (64 MiB physical) -> ~45 MiB


def _fit(dim, pref, align):
    """Largest divisor of `dim` that is <= pref and a multiple of `align`.

    Falls back to the full dim only when no aligned divisor exists (full-axis
    blocks are always layout-legal).
    """
    if dim <= pref:
        return dim
    t = (min(pref, dim) // align) * align
    while t >= align:
        if dim % t == 0:
            return t
        t -= align
    return dim


def _split_tiles(B, D, limit):
    """Pick (tm, tn) for the split path so both kernels fit the VMEM budget."""
    budget = int(limit * 0.75)
    tn = _fit(D, 256, 128)
    for pref in (1024, 512, 256, 128, 64, 32, 16, 8):
        tm = _fit(B, pref, 8)
        # Kernel A: x panel f32 (dbl-buf), W1 panel bf16 (dbl-buf), y1 tile, stats.
        est_a = 2 * (tm * D * 4) + 2 * (D * tn * 2) + 2 * (tm * tn * 2) + 4 * (8 * tn * 4)
        # Kernel B: y1 panel bf16, W2 panel bf16, scale/shift, x tile, 2 f32 outs.
        est_b = (2 * (tm * D * 2) + 2 * (D * tn * 2) + 4 * (D * 4)
                 + 2 * (tm * tn * 4) + 4 * (tm * tn * 4))
        if max(est_a, est_b) <= budget:
            return tm, tn
    return _fit(B, 8, 8), tn


def pack_params(params):
    """One-time weight packing (hoisted out of the forward path).

    Drops b1: training-mode BatchNorm subtracts the batch mean, which cancels
    any per-feature constant exactly.  (If BN ever runs with eval-mode running
    stats, b1 becomes load-bearing again.)
    """
    w1, b1, gamma, beta, w2, b2 = params
    del b1
    w1t = jnp.transpose(w1).astype(jnp.bfloat16)  # (in, out)
    w2t = jnp.transpose(w2).astype(jnp.bfloat16)  # (in, out)
    return (w1t, gamma, beta, w2t, b2)


# --------------------------------------------------------------------------- #
# Fused path (small problems): everything resident in VMEM, single launch.
# --------------------------------------------------------------------------- #
def _fused_kernel(x_ref, w1t_ref, g_ref, beta_ref, w2t_ref, b2_ref, y_ref, r_ref):
    x = x_ref[...]
    y1 = jnp.dot(x.astype(jnp.bfloat16), w1t_ref[...],
                 preferred_element_type=jnp.float32)
    mean = jnp.mean(y1, axis=0, keepdims=True)
    c = y1 - mean
    var = jnp.mean(c * c, axis=0, keepdims=True)
    scale = g_ref[...] * jax.lax.rsqrt(var + EPS)        # rsqrt on EUP
    h = jnp.maximum(c * scale + beta_ref[...], 0.0)
    r = jnp.dot(h.astype(jnp.bfloat16), w2t_ref[...],
                preferred_element_type=jnp.float32) + b2_ref[...]
    r_ref[...] = r.astype(r_ref.dtype)
    y_ref[...] = (x.astype(jnp.float32) + r).astype(y_ref.dtype)


def _fused_call(x, w1t, gamma, beta, w2t, b2, limit):
    B, D = x.shape
    return pl.pallas_call(
        _fused_kernel,
        out_shape=(jax.ShapeDtypeStruct((B, D), x.dtype),
                   jax.ShapeDtypeStruct((B, D), x.dtype)),
        grid_spec=pltpu.PrefetchScalarGridSpec(
            num_scalar_prefetch=0,
            grid=(1,),
            in_specs=[
                pl.BlockSpec((B, D), lambda i: (0, 0)),   # x (f32, cast in kernel)
                pl.BlockSpec((D, D), lambda i: (0, 0)),   # W1t bf16
                pl.BlockSpec((1, D), lambda i: (0, 0)),   # gamma
                pl.BlockSpec((1, D), lambda i: (0, 0)),   # beta
                pl.BlockSpec((D, D), lambda i: (0, 0)),   # W2t bf16
                pl.BlockSpec((1, D), lambda i: (0, 0)),   # b2
            ],
            out_specs=(
                pl.BlockSpec((B, D), lambda i: (0, 0)),   # x + r
                pl.BlockSpec((B, D), lambda i: (0, 0)),   # r
            ),
        ),
        compiler_params=pltpu.CompilerParams(
            dimension_semantics=("arbitrary",),
            vmem_limit_bytes=limit,
        ),
    )(x, w1t, gamma, beta, w2t, b2)


# --------------------------------------------------------------------------- #
# Split path (general, VMEM independent of B).
# Kernel A: y1 = x @ W1t (bf16 out) + per-batch-tile sum / sumsq partials.
# --------------------------------------------------------------------------- #
def _lin1_stats_kernel(x_ref, w1t_ref, y1_ref, sum_ref, ssq_ref):
    y1 = jnp.dot(x_ref[...].astype(jnp.bfloat16), w1t_ref[...],
                 preferred_element_type=jnp.float32)
    y1_ref[...] = y1.astype(y1_ref.dtype)
    s = jnp.sum(y1, axis=0, keepdims=True)          # (1, tn) exact f32 partials
    sq = jnp.sum(y1 * y1, axis=0, keepdims=True)
    sum_ref[...] = jnp.broadcast_to(s, sum_ref.shape)    # (8, tn) layout-safe tile
    ssq_ref[...] = jnp.broadcast_to(sq, ssq_ref.shape)


# Kernel B: h = relu(y1 * scale + shift) fused into r = h @ W2t + b2 ; y = x + r.
def _norm_lin2_residual_kernel(y1_ref, scale_ref, shift_ref, w2t_ref, b2_ref,
                               x_ref, y_ref, r_ref):
    h = jnp.maximum(y1_ref[...].astype(jnp.float32) * scale_ref[...]
                    + shift_ref[...], 0.0)
    r = jnp.dot(h.astype(jnp.bfloat16), w2t_ref[...],
                preferred_element_type=jnp.float32) + b2_ref[...]
    r_ref[...] = r.astype(r_ref.dtype)
    y_ref[...] = (x_ref[...].astype(jnp.float32) + r).astype(y_ref.dtype)


def _split_call(x, w1t, gamma, beta, w2t, b2, limit, tm, tn):
    B, D = x.shape
    auto_tm, auto_tn = _split_tiles(B, D, limit)
    tm = auto_tm if tm is None else tm
    tn = auto_tn if tn is None else tn
    if B % tm != 0 or D % tn != 0:
        raise ValueError(f"tile sizes must divide (B, D): tm={tm}, tn={tn}, B={B}, D={D}")
    gm, gn = B // tm, D // tn

    cp = pltpu.CompilerParams(
        dimension_semantics=("parallel", "parallel"),
        vmem_limit_bytes=limit,
    )

    # ---- Pass A: Linear1 + partial batch statistics ----
    y1, psum, psq = pl.pallas_call(
        _lin1_stats_kernel,
        out_shape=(
            jax.ShapeDtypeStruct((B, D), jnp.bfloat16),
            jax.ShapeDtypeStruct((gm * 8, D), jnp.float32),
            jax.ShapeDtypeStruct((gm * 8, D), jnp.float32),
        ),
        grid_spec=pltpu.PrefetchScalarGridSpec(
            num_scalar_prefetch=0,
            grid=(gm, gn),
            in_specs=[
                pl.BlockSpec((tm, D), lambda m, n: (m, 0)),   # x panel, resident over n
                pl.BlockSpec((D, tn), lambda m, n: (0, n)),   # W1t panel (full K)
            ],
            out_specs=(
                pl.BlockSpec((tm, tn), lambda m, n: (m, n)),  # y1 (bf16)
                pl.BlockSpec((8, tn), lambda m, n: (m, n)),   # partial sum
                pl.BlockSpec((8, tn), lambda m, n: (m, n)),   # partial sumsq
            ),
        ),
        compiler_params=cp,
    )(x, w1t)

    # ---- Tiny (1, D) stat reduction + affine fold (XLA; negligible traffic) ----
    psum_g = psum.reshape(gm, 8, D)[:, 0, :]
    psq_g = psq.reshape(gm, 8, D)[:, 0, :]
    mean = jnp.sum(psum_g, axis=0, keepdims=True) / B
    var = jnp.maximum(jnp.sum(psq_g, axis=0, keepdims=True) / B - mean * mean, 0.0)
    scale = gamma * jax.lax.rsqrt(var + EPS)
    shift = beta - mean * scale

    # ---- Pass B: normalize+ReLU fused into Linear2 + bias + residual ----
    y, r = pl.pallas_call(
        _norm_lin2_residual_kernel,
        out_shape=(
            jax.ShapeDtypeStruct((B, D), x.dtype),
            jax.ShapeDtypeStruct((B, D), x.dtype),
        ),
        grid_spec=pltpu.PrefetchScalarGridSpec(
            num_scalar_prefetch=0,
            grid=(gm, gn),
            in_specs=[
                pl.BlockSpec((tm, D), lambda m, n: (m, 0)),   # y1 panel, resident over n
                pl.BlockSpec((1, D), lambda m, n: (0, 0)),    # scale
                pl.BlockSpec((1, D), lambda m, n: (0, 0)),    # shift
                pl.BlockSpec((D, tn), lambda m, n: (0, n)),   # W2t panel (full K)
                pl.BlockSpec((1, tn), lambda m, n: (0, n)),   # b2
                pl.BlockSpec((tm, tn), lambda m, n: (m, n)),  # x residual tile
            ],
            out_specs=(
                pl.BlockSpec((tm, tn), lambda m, n: (m, n)),  # x + r
                pl.BlockSpec((tm, tn), lambda m, n: (m, n)),  # r
            ),
        ),
        compiler_params=cp,
    )(y1, scale, shift, w2t, b2, x)
    return y, r


# --------------------------------------------------------------------------- #
# Forward wrapper
# --------------------------------------------------------------------------- #
@functools.partial(jax.jit, static_argnames=("mode", "tm", "tn"))
def resblock_forward(x, packed_params, mode="auto", tm=None, tn=None):
    """x: (B, D) float32, packed_params from pack_params(). Returns (x + r, r)."""
    B, D = x.shape
    w1t, gamma, beta, w2t, b2 = packed_params
    limit = _vmem_limit()

    if mode == "auto":
        # Rough fused-path footprint: x + 2 weights + 2 outputs + intermediates.
        fused_est = 36 * B * D + 8 * D * D + 24 * D
        mode = "fused" if fused_est <= limit // 2 else "split"

    if mode == "fused":
        return _fused_call(x, w1t, gamma, beta, w2t, b2, limit)
    return _split_call(x, w1t, gamma, beta, w2t, b2, limit, tm, tn)


# --------------------------------------------------------------------------- #
# Parameter init (mimics PyTorch defaults) and pure-JAX f32 reference.
# --------------------------------------------------------------------------- #
def init_params(key, dim):
    k1, k2, k3, k4 = jax.random.split(key, 4)
    bound = 1.0 / jnp.sqrt(dim)
    w1 = jax.random.uniform(k1, (dim, dim), jnp.float32, -bound, bound)
    b1 = jax.random.uniform(k2, (1, dim), jnp.float32, -bound, bound)
    w2 = jax.random.uniform(k3, (dim, dim), jnp.float32, -bound, bound)
    b2 = jax.random.uniform(k4, (1, dim), jnp.float32, -bound, bound)
    gamma = jnp.ones((1, dim), jnp.float32)   # BatchNorm1d weight init
    beta = jnp.zeros((1, dim), jnp.float32)   # BatchNorm1d bias init
    return (w1, b1, gamma, beta, w2, b2)


def reference_forward(x, params):
    """f32 reference of ResBlock.forward (keeps b1: it cancels under train-mode BN)."""
    w1, b1, gamma, beta, w2, b2 = params
    y1 = x @ w1.T + b1
    mean = jnp.mean(y1, axis=0, keepdims=True)
    var = jnp.mean((y1 - mean) ** 2, axis=0, keepdims=True)
    h = (y1 - mean) / jnp.sqrt(var + EPS) * gamma + beta
    h = jnp.maximum(h, 0.0)
    r = h @ w2.T + b2
    return x + r, r


if __name__ == "__main__":
    key = jax.random.PRNGKey(0)

    # ---- Case 1: small problem -> fused single-kernel path ----
    B, D = 8, 128
    k1, k2, key = jax.random.split(key, 3)
    x = jax.random.normal(k1, (B, D), jnp.float32)
    params = init_params(k2, D)
    packed = pack_params(params)            # one-time weight packing (hoisted)

    y, r = resblock_forward(x, packed)      # auto -> fused
    jax.block_until_ready((y, r))
    y_ref, r_ref = reference_forward(x, params)
    assert jnp.allclose(y, y_ref, atol=2e-2, rtol=2e-2), "fused path mismatch (x + r)"
    assert jnp.allclose(r, r_ref, atol=2e-2, rtol=2e-2), "fused path mismatch (r)"

    # ---- Case 2: force the B-decoupled split path with a multi-tile grid ----
    B2, D2 = 32, 256
    k3, k4 = jax.random.split(key)
    x2 = jax.random.normal(k3, (B2, D2), jnp.float32)
    params2 = init_params(k4, D2)
    packed2 = pack_params(params2)

    y2, r2 = resblock_forward(x2, packed2, mode="split", tm=16, tn=128)
    jax.block_until_ready((y2, r2))
    y2_ref, r2_ref = reference_forward(x2, params2)
    assert jnp.allclose(y2, y2_ref, atol=2e-2, rtol=2e-2), "split path mismatch (x + r)"
    assert jnp.allclose(r2, r2_ref, atol=2e-2, rtol=2e-2), "split path mismatch (r)"

    print("KERNEL_OK")
</pallas_src>

<mosaic_0001>
module attributes {stable_mosaic.version = 11 : i64} {
  func.func @_fused_kernel(%arg0: i32, %arg1: memref<8x128xf32, #tpu.memory_space<vmem>>, %arg2: memref<128x128xbf16, #tpu.memory_space<vmem>>, %arg3: memref<1x128xf32, #tpu.memory_space<vmem>>, %arg4: memref<1x128xf32, #tpu.memory_space<vmem>>, %arg5: memref<128x128xbf16, #tpu.memory_space<vmem>>, %arg6: memref<1x128xf32, #tpu.memory_space<vmem>>, %arg7: memref<8x128xf32, #tpu.memory_space<vmem>>, %arg8: memref<8x128xf32, #tpu.memory_space<vmem>>) attributes {dimension_semantics = [#tpu.dimension_semantics<arbitrary>], iteration_bounds = array<i64: 1>, scalar_prefetch = 0 : i64, scratch_operands = 0 : i64, tpu.core_type = #tpu.core_type<tc>, window_params = [{pipeline_mode = #tpu.pipeline_mode<synchronous>, transform_indices = @transform_0, window_bounds = array<i64: 8, 128>}, {pipeline_mode = #tpu.pipeline_mode<synchronous>, transform_indices = @transform_1, window_bounds = array<i64: 128, 128>}, {pipeline_mode = #tpu.pipeline_mode<synchronous>, transform_indices = @transform_2, window_bounds = array<i64: 1, 128>}, {pipeline_mode = #tpu.pipeline_mode<synchronous>, transform_indices = @transform_3, window_bounds = array<i64: 1, 128>}, {pipeline_mode = #tpu.pipeline_mode<synchronous>, transform_indices = @transform_4, window_bounds = array<i64: 128, 128>}, {pipeline_mode = #tpu.pipeline_mode<synchronous>, transform_indices = @transform_5, window_bounds = array<i64: 1, 128>}, {pipeline_mode = #tpu.pipeline_mode<synchronous>, transform_indices = @transform_6, window_bounds = array<i64: 8, 128>}, {pipeline_mode = #tpu.pipeline_mode<synchronous>, transform_indices = @transform_7, window_bounds = array<i64: 8, 128>}]} {
    %c0 = arith.constant 0 : index
    %c0_0 = arith.constant 0 : index
    %0 = vector.load %arg1[%c0, %c0_0] : memref<8x128xf32, #tpu.memory_space<vmem>>, vector<8x128xf32>
    %1 = arith.truncf %0 : vector<8x128xf32> to vector<8x128xbf16>
    %c0_1 = arith.constant 0 : index
    %c0_2 = arith.constant 0 : index
    %2 = vector.load %arg2[%c0_1, %c0_2] : memref<128x128xbf16, #tpu.memory_space<vmem>>, vector<128x128xbf16>
    %cst = arith.constant dense<0.000000e+00> : vector<8x128xf32>
    %3 = tpu.matmul %1, %2, %cst {dimension_numbers = #tpu.dot_dimension_numbers<[1], [0], [0], [1], [0, 0, 1, 1], [], []>} : vector<8x128xbf16>, vector<128x128xbf16>, vector<8x128xf32> -> vector<8x128xf32>
    %cst_3 = arith.constant dense<0.000000e+00> : vector<128xf32>
    %4 = vector.multi_reduction <add>, %3, %cst_3 [0] : vector<8x128xf32> to vector<128xf32>
    %5 = vector.shape_cast %4 : vector<128xf32> to vector<1x128xf32>
    %cst_4 = arith.constant 8.000000e+00 : f32
    %6 = vector.broadcast %cst_4 : f32 to vector<1x128xf32>
    %7 = arith.divf %5, %6 : vector<1x128xf32>
    %8 = vector.broadcast %7 : vector<1x128xf32> to vector<8x128xf32>
    %9 = arith.subf %3, %8 : vector<8x128xf32>
    %10 = arith.mulf %9, %9 : vector<8x128xf32>
    %cst_5 = arith.constant dense<0.000000e+00> : vector<128xf32>
    %11 = vector.multi_reduction <add>, %10, %cst_5 [0] : vector<8x128xf32> to vector<128xf32>
    %12 = vector.shape_cast %11 : vector<128xf32> to vector<1x128xf32>
    %cst_6 = arith.constant 8.000000e+00 : f32
    %13 = vector.broadcast %cst_6 : f32 to vector<1x128xf32>
    %14 = arith.divf %12, %13 : vector<1x128xf32>
    %c0_7 = arith.constant 0 : index
    %c0_8 = arith.constant 0 : index
    %15 = vector.load %arg3[%c0_7, %c0_8] : memref<1x128xf32, #tpu.memory_space<vmem>>, vector<1x128xf32>
    %cst_9 = arith.constant 9.99999974E-6 : f32
    %16 = vector.broadcast %cst_9 : f32 to vector<1x128xf32>
    %17 = arith.addf %14, %16 : vector<1x128xf32>
    %18 = math.rsqrt %17 : vector<1x128xf32>
    %19 = arith.mulf %15, %18 : vector<1x128xf32>
    %20 = vector.broadcast %19 : vector<1x128xf32> to vector<8x128xf32>
    %21 = arith.mulf %9, %20 : vector<8x128xf32>
    %c0_10 = arith.constant 0 : index
    %c0_11 = arith.constant 0 : index
    %22 = vector.load %arg4[%c0_10, %c0_11] : memref<1x128xf32, #tpu.memory_space<vmem>>, vector<1x128xf32>
    %23 = vector.broadcast %22 : vector<1x128xf32> to vector<8x128xf32>
    %24 = arith.addf %21, %23 : vector<8x128xf32>
    %cst_12 = arith.constant 0.000000e+00 : f32
    %25 = vector.broadcast %cst_12 : f32 to vector<8x128xf32>
    %26 = arith.maximumf %24, %25 : vector<8x128xf32>
    %27 = arith.truncf %26 : vector<8x128xf32> to vector<8x128xbf16>
    %c0_13 = arith.constant 0 : index
    %c0_14 = arith.constant 0 : index
    %28 = vector.load %arg5[%c0_13, %c0_14] : memref<128x128xbf16, #tpu.memory_space<vmem>>, vector<128x128xbf16>
    %cst_15 = arith.constant dense<0.000000e+00> : vector<8x128xf32>
    %29 = tpu.matmul %27, %28, %cst_15 {dimension_numbers = #tpu.dot_dimension_numbers<[1], [0], [0], [1], [0, 0, 1, 1], [], []>} : vector<8x128xbf16>, vector<128x128xbf16>, vector<8x128xf32> -> vector<8x128xf32>
    %c0_16 = arith.constant 0 : index
    %c0_17 = arith.constant 0 : index
    %30 = vector.load %arg6[%c0_16, %c0_17] : memref<1x128xf32, #tpu.memory_space<vmem>>, vector<1x128xf32>
    %31 = vector.broadcast %30 : vector<1x128xf32> to vector<8x128xf32>
    %32 = arith.addf %29, %31 : vector<8x128xf32>
    %c0_18 = arith.constant 0 : index
    %c0_19 = arith.constant 0 : index
    %33 = vector.load %arg8[%c0_18, %c0_19] : memref<8x128xf32, #tpu.memory_space<vmem>>, vector<8x128xf32>
    tpu.vector_store %arg8[%c0_18, %c0_19], %32 {strides = array<i32>} : memref<8x128xf32, #tpu.memory_space<vmem>>, vector<8x128xf32>,
    %34 = arith.addf %0, %32 : vector<8x128xf32>
    %c0_20 = arith.constant 0 : index
    %c0_21 = arith.constant 0 : index
    %35 = vector.load %arg7[%c0_20, %c0_21] : memref<8x128xf32, #tpu.memory_space<vmem>>, vector<8x128xf32>
    tpu.vector_store %arg7[%c0_20, %c0_21], %34 {strides = array<i32>} : memref<8x128xf32, #tpu.memory_space<vmem>>, vector<8x128xf32>,
    return
  }
  func.func @transform_0(%arg0: i32) -> (i32, i32) {
    %c0_i32 = arith.constant 0 : i32
    %c0_i32_0 = arith.constant 0 : i32
    %c0_i32_1 = arith.constant 0 : i32
    return %c0_i32, %c0_i32_0 : i32, i32
  }
  func.func @transform_1(%arg0: i32) -> (i32, i32) {
    %c0_i32 = arith.constant 0 : i32
    %c0_i32_0 = arith.constant 0 : i32
    %c0_i32_1 = arith.constant 0 : i32
    return %c0_i32, %c0_i32_0 : i32, i32
  }
  func.func @transform_2(%arg0: i32) -> (i32, i32) {
    %c0_i32 = arith.constant 0 : i32
    %c0_i32_0 = arith.constant 0 : i32
    %c0_i32_1 = arith.constant 0 : i32
    return %c0_i32, %c0_i32_0 : i32, i32
  }
  func.func @transform_3(%arg0: i32) -> (i32, i32) {
    %c0_i32 = arith.constant 0 : i32
    %c0_i32_0 = arith.constant 0 : i32
    %c0_i32_1 = arith.constant 0 : i32
    return %c0_i32, %c0_i32_0 : i32, i32
  }
  func.func @transform_4(%arg0: i32) -> (i32, i32) {
    %c0_i32 = arith.constant 0 : i32
    %c0_i32_0 = arith.constant 0 : i32
    %c0_i32_1 = arith.constant 0 : i32
    return %c0_i32, %c0_i32_0 : i32, i32
  }
  func.func @transform_5(%arg0: i32) -> (i32, i32) {
    %c0_i32 = arith.constant 0 : i32
    %c0_i32_0 = arith.constant 0 : i32
    %c0_i32_1 = arith.constant 0 : i32
    return %c0_i32, %c0_i32_0 : i32, i32
  }
  func.func @transform_6(%arg0: i32) -> (i32, i32) {
    %c0_i32 = arith.constant 0 : i32
    %c0_i32_0 = arith.constant 0 : i32
    %c0_i32_1 = arith.constant 0 : i32
    return %c0_i32, %c0_i32_0 : i32, i32
  }
  func.func @transform_7(%arg0: i32) -> (i32, i32) {
    %c0_i32 = arith.constant 0 : i32
    %c0_i32_0 = arith.constant 0 : i32
    %c0_i32_1 = arith.constant 0 : i32
    return %c0_i32, %c0_i32_0 : i32, i32
  }
}

</mosaic_0001>

<bundles_post_ra>
// kernel: resblock_forward.1
= control target key start
LH: loop header
LB: loop body
LE: loop exit
PB: predicated region body
PF: predicated region fallthrough
CT: control target
= control target key end

     0   :  { %13 = vsyncpa [#allocation3], 0  ;;  %s705_s0 = inlined_call_operand.hbm [shape: f32[8,128], index: 0, kind: input, shape index: {}]   ;;  %s706_s1 = inlined_call_operand.hbm [shape: bf16[128,128], index: 1, kind: input, shape index: {}]   ;;  %s707_s2 = inlined_call_operand.vmem [shape: f32[1,128], index: 2, kind: input, shape index: {}]   ;;  %s708_s3 = inlined_call_operand.vmem [shape: f32[1,128], index: 3, kind: input, shape index: {}]   ;;  %s709_s4 = inlined_call_operand.hbm [shape: bf16[128,128], index: 4, kind: input, shape index: {}]   ;;  %s710_s5 = inlined_call_operand.vmem [shape: f32[1,128], index: 5, kind: input, shape index: {}]   ;;  %s711_s6 = inlined_call_operand.hbm [shape: f32[8,128], index: 6, kind: output, shape index: {0}]   ;;  %s712_s7 = inlined_call_operand.hbm [shape: f32[8,128], index: 7, kind: output, shape index: {1}]  }
   0x1   :  { %14 = vsyncpa [#allocation6], 0 }
   0x2   :  { %15 = vsyncpa [#allocation4], 0 }
   0x3   :  { %16 = vsyncpa [#allocation10], 0  ;;  %s576_s24 = smov [#allocation5]   ;;  %s458_s28 = scalar_lea.hbm %s706_s1, 1024 }
   0x4   :  { %s32_s25 = sshll.u32 %s576_s24, 4  ;;  %p459_p0 = scmp.ne.s32.totalorder %s706_s1, %s458_s28  ;;  %s33_s25 = int_to_ptr.vmem [resolvable:$true] %s32_s25 }
   0x5   :  { %p462_p1 = scmp.lt.u32.totalorder %s458_s28, %s706_s1 }
   0x7   :  { %p464_p2 = pnand %p462_p1, %p459_p0 }
   0x9   :  { %467 = shalt.err (!%p464_p2)
}
   0xa   :  { %s468_s10 = scalar_lea.vmem %s33_s25, 1024  ;;  %p473_p4 = scmp.lt.s32.totalorder %s33_s25, %s33_s25 }
   0xb   :  { %p469_p3 = scmp.ne.s32.totalorder %s33_s25, %s468_s10  ;;  %p474_p5 = scmp.lt.s32.totalorder %s468_s10, %s468_s10 }
   0xd   :  { %p475_p6 = por %p474_p5, %p473_p4 }
   0xf   :  { %p476_p7 = pnand %p475_p6, %p469_p3 }
  0x11   :  { %479 = shalt.err (!%p476_p7)
}
  0x12   :  { %s577_s11 = smov 64   ;;  %s578_s12 = smov 4  }
  0x13   :  { %38 = dma.hbm_to_vmem [thread:$0]  %s706_s1, 1024, %s33_s25, [#allocation6], %s577_s11, %s577_s11, %s578_s12  }
  0x14   :  { %s579_s15 = smov [#allocation2]   ;;  %s580_s17 = smov [#allocation7]  }
  0x15   :  { %s23_s16 = sshll.u32 %s579_s15, 4  ;;  %s48_s18 = sshll.u32 %s580_s17, 4  ;;  %s24_s16 = int_to_ptr.vmem [resolvable:$true] %s23_s16  ;;  %s49_s18 = int_to_ptr.vmem [resolvable:$true] %s48_s18 }
  0x16   :  { %s480_s21 = scalar_lea.hbm %s705_s0, 128 }
  0x17   :  { %p481_p8 = scmp.ne.s32.totalorder %s705_s0, %s480_s21  ;;  %p484_p9 = scmp.lt.u32.totalorder %s480_s21, %s705_s0 }
  0x19   :  { %p486_p10 = pnand %p484_p9, %p481_p8 }
  0x1b   :  { %489 = shalt.err (!%p486_p10)
}
  0x1c   :  { %s490_s1 = scalar_lea.vmem %s24_s16, 128  ;;  %p495_p12 = scmp.lt.s32.totalorder %s24_s16, %s24_s16 }
  0x1d   :  { %p491_p11 = scmp.ne.s32.totalorder %s24_s16, %s490_s1  ;;  %p496_p13 = scmp.lt.s32.totalorder %s490_s1, %s490_s1 }
  0x1f   :  { %p497_p0 = por %p496_p13, %p495_p12 }
  0x21   :  { %p498_p1 = pnand %p497_p0, %p491_p11 }
  0x23   :  { %501 = shalt.err (!%p498_p1)
}
  0x24   :  { %26 = dma.hbm_to_vmem [thread:$0]  %s705_s0, 128, %s24_s16, [#allocation3]  }
  0x25   :  { %s502_s30 = scalar_lea.hbm %s709_s4, 1024 }
  0x26   :  { %p503_p2 = scmp.ne.s32.totalorder %s709_s4, %s502_s30  ;;  %p506_p3 = scmp.lt.u32.totalorder %s502_s30, %s709_s4 }
  0x28   :  { %p508_p4 = pnand %p506_p3, %p503_p2 }
  0x2a   :  { %511 = shalt.err (!%p508_p4)
}
  0x2b   :  { %s512_s14 = scalar_lea.vmem %s49_s18, 1024  ;;  %p517_p6 = scmp.lt.s32.totalorder %s49_s18, %s49_s18 }
  0x2c   :  { %p513_p5 = scmp.ne.s32.totalorder %s49_s18, %s512_s14  ;;  %p518_p7 = scmp.lt.s32.totalorder %s512_s14, %s512_s14 }
  0x2e   :  { %p519_p8 = por %p518_p7, %p517_p6 }
  0x30   :  { %p520_p9 = pnand %p519_p8, %p513_p5 }
  0x32   :  { %523 = shalt.err (!%p520_p9)
}
  0x33   :  { %54 = dma.hbm_to_vmem [thread:$0]  %s709_s4, 1024, %s49_s18, [#allocation6], %s577_s11, %s577_s11, %s578_s12  }
  0x34   :  { %568 = dma.done.wait [#allocation3], 128  }
  0x35   :  { %569 = vsyncadd [#allocation3], 4294967168 }
  0x36   :  { %570 = dma.done.wait [#allocation6], 2048  }
  0x37   :  { %571 = vsyncadd [#allocation6], 4294965248  ;;  %v581_v0 = vmov 0.0   ;;  %vm582_vm0 = vmmov 0   ;;  %v440_v1 = vld [vmem:[#allocation5] sm:$0xff]   ;;  %v441_v2 = vld [vmem:[#allocation5 + $0x8] sm:$0xff]   ;;  %v195_v40 = vlaneseq }
  0x38   :  { %391 = vmatprep.subr.bf16.mxu0 %v581_v0  ;;  %407 = vmatprep.mubr.msk.bf16.mxu0 %vm582_vm0, %v581_v0  ;;  %v442_v3 = vld [vmem:[#allocation5 + $0x10] sm:$0xff]   ;;  %v443_v4 = vld [vmem:[#allocation5 + $0x18] sm:$0xff]   ;;  %v444_v5 = vld [vmem:[#allocation5 + $0x20] sm:$0xff]   ;;  %s583_s19 = smov [#allocation9]  }
  0x39   :  { %411 = vmatprep.subr.bf16.mxu1 %v581_v0  ;;  %427 = vmatprep.mubr.msk.bf16.mxu1 %vm582_vm0, %v581_v0  ;;  %v445_v6 = vld [vmem:[#allocation5 + $0x28] sm:$0xff]   ;;  %v446_v7 = vld [vmem:[#allocation5 + $0x30] sm:$0xff]   ;;  %v447_v8 = vld [vmem:[#allocation5 + $0x38] sm:$0xff]   ;;  %v196_v41 = vshrl.u32 %v195_v40, 7  ;;  %s341_s20 = sshll.u32 %s583_s19, 4  ;;  %s342_s20 = int_to_ptr.vmem [resolvable:$true] %s341_s20 }
  0x3a   :  { %392 = vmatpush3.bf16.msra.mxu0 %v440_v1  ;;  %v667_v9 = vld [vmem:[#allocation2] sm:$0xff]  ;;  %v448_v11 = vld [vmem:[#allocation7] sm:$0xff]   ;;  %v449_v12 = vld [vmem:[#allocation7 + $0x8] sm:$0xff]   ;;  %p529_p11 = scmp.lt.s32.totalorder %s342_s20, %s342_s20 }
  0x3b   :  { %393 = vmatprep.subr.bf16.mxu0 %v581_v0  ;;  %v68_v10 = vpack.c.bf16 %v667_v9, %v667_v9  ;;  %412 = vmatpush3.bf16.msra.mxu1 %v448_v11  ;;  %v450_v13 = vld [vmem:[#allocation7 + $0x10] sm:$0xff]   ;;  %v451_v14 = vld [vmem:[#allocation7 + $0x18] sm:$0xff]   ;;  %v452_v15 = vld [vmem:[#allocation7 + $0x20] sm:$0xff]   ;;  %v197_v43 = vsub.s32 0, %v196_v41 }
  0x3c   :  { %413 = vmatprep.subr.bf16.mxu1 %v581_v0  ;;  %v453_v16 = vld [vmem:[#allocation7 + $0x28] sm:$0xff]   ;;  %v454_v17 = vld [vmem:[#allocation7 + $0x30] sm:$0xff]   ;;  %v455_v18 = vld [vmem:[#allocation7 + $0x38] sm:$0xff]  }
  0x3d   :  { %v190_v42 = vld [vmem:[%s707_s2] sm:$0x1]  ;;  %s584_s2 = smov [#allocation8]  }
  0x3e   :  { %394 = vmatpush3.bf16.msra.mxu0 %v441_v2  ;;  %v363_v47 = vld [vmem:[%s708_s3] ss:$0 sm:$0xff]  ;;  %s331_s21 = sshll.u32 %s584_s2, 4  ;;  %s524_s3 = scalar_lea.vmem %s342_s20, 128  ;;  %s332_s21 = int_to_ptr.vmem [resolvable:$true] %s331_s21 }
  0x3f   :  { %395 = vmatprep.subr.bf16.mxu0 %v581_v0  ;;  %414 = vmatpush3.bf16.msra.mxu1 %v449_v12  ;;  %v364_v52 = vld [vmem:[%s710_s5] ss:$0 sm:$0xff]  ;;  %p525_p10 = scmp.ne.s32.totalorder %s342_s20, %s524_s3  ;;  %p530_p12 = scmp.lt.s32.totalorder %s524_s3, %s524_s3 }
  0x40   :  { %415 = vmatprep.subr.bf16.mxu1 %v581_v0 }
  0x41   :  { %p531_p13 = por %p530_p12, %p529_p11 }
  0x42   :  { %396 = vmatpush3.bf16.msra.mxu0 %v442_v3 }
  0x43   :  { %397 = vmatprep.subr.bf16.mxu0 %v581_v0  ;;  %416 = vmatpush3.bf16.msra.mxu1 %v450_v13  ;;  %p532_p0 = pnand %p531_p13, %p525_p10 }
  0x44   :  { %417 = vmatprep.subr.bf16.mxu1 %v581_v0 }
  0x46   :  { %398 = vmatpush3.bf16.msra.mxu0 %v443_v4 }
  0x47   :  { %399 = vmatprep.subr.bf16.mxu0 %v581_v0  ;;  %418 = vmatpush3.bf16.msra.mxu1 %v451_v14 }
  0x48   :  { %419 = vmatprep.subr.bf16.mxu1 %v581_v0 }
  0x4a   :  { %400 = vmatpush3.bf16.msra.mxu0 %v444_v5 }
  0x4b   :  { %401 = vmatprep.subr.bf16.mxu0 %v581_v0  ;;  %420 = vmatpush3.bf16.msra.mxu1 %v452_v15 }
  0x4c   :  { %421 = vmatprep.subr.bf16.mxu1 %v581_v0 }
  0x4e   :  { %402 = vmatpush3.bf16.msra.mxu0 %v445_v6 }
  0x4f   :  { %403 = vmatprep.subr.bf16.mxu0 %v581_v0  ;;  %422 = vmatpush3.bf16.msra.mxu1 %v453_v16 }
  0x50   :  { %423 = vmatprep.subr.bf16.mxu1 %v581_v0 }
  0x52   :  { %404 = vmatpush3.bf16.msra.mxu0 %v446_v7 }
  0x53   :  { %405 = vmatprep.subr.bf16.mxu0 %v581_v0  ;;  %424 = vmatpush3.bf16.msra.mxu1 %v454_v17 }
  0x54   :  { %425 = vmatprep.subr.bf16.mxu1 %v581_v0 }
  0x56   :  { %406 = vmatpush3.bf16.msra.mxu0 %v447_v8 }
  0x57   :  { %426 = vmatpush3.bf16.msra.mxu1 %v455_v18 }
  0x59   :  { %408 = vmatmul.mubr.bf16.vlgmr.msra.gmra.mrb[0].mxu0 %v68_v10 }
 0x12c   :  { %v167_v19 = vpop.f32.mrb[0].mxu0 }
 0x12d   :  { %v173_v20 = vrot.slane %v167_v19, 4  ;;  %v409_v21 = vpop.f32.mrb[1].mxu0 }
 0x12e   :  { %v170_v22 = vpop.f32.mrb[2].mxu0 }
 0x12f   :  { %v174_v23 = vadd.f32 %v173_v20, %v167_v19  ;;  %v410_v24 = vpop.f32.mrb[3].mxu0 }
 0x131   :  { %v175_v25 = vrot.slane %v174_v23, 2 }
 0x133   :  { %v176_v26 = vadd.f32 %v175_v25, %v174_v23 }
 0x135   :  { %v177_v27 = vrot.slane %v176_v26, 1 }
 0x137   :  { %v178_v28 = vadd.f32 %v177_v27, %v176_v26 }
 0x139   :  { %v180_v29 = vmul.f32 0.125, %v178_v28 }
 0x13b   :  { %v181_v30 = vsub.f32 %v167_v19, %v180_v29 }
 0x13d   :  { %v182_v31 = vmul.f32 %v181_v30, %v181_v30 }
 0x13f   :  { %v183_v32 = vrot.slane %v182_v31, 4 }
 0x141   :  { %v184_v33 = vadd.f32 %v183_v32, %v182_v31 }
 0x143   :  { %v185_v34 = vrot.slane %v184_v33, 2 }
 0x145   :  { %v186_v35 = vadd.f32 %v185_v34, %v184_v33 }
 0x147   :  { %v187_v36 = vrot.slane %v186_v35, 1 }
 0x149   :  { %v188_v37 = vadd.f32 %v187_v36, %v186_v35 }
 0x14b   :  { %v189_v38 = vmul.f32 0.125, %v188_v37 }
 0x14d   :  { %v191_v39 = vadd.f32 1e-05, %v189_v38 }
 0x14f   :  { %456 = vrsqrt.f32 %v191_v39 }
 0x159   :  { %v457_v44 = vpop.eup %456 }
 0x15a   :  { %v193_v45 = vmul.f32 %v457_v44, %v190_v42 }
 0x15c   :  { %v198_v46 = vrot.slane %v193_v45, %v197_v43 }
 0x15e   :  { %v200_v48 = vmul.f32 %v198_v46, %v181_v30 }
 0x160   :  { %v208_v49 = vadd.f32 %v363_v47, %v200_v48 }
 0x162   :  { %v209_v50 = vmax.f32 %v208_v49, 0.0 }
 0x164   :  { %v210_v51 = vpack.c.bf16 %v209_v50, %v209_v50 }
 0x166   :  { %428 = vmatmul.mubr.bf16.vlgmr.msra.gmra.mrb[0].mxu1 %v210_v51 }
 0x239   :  { %v316_v53 = vpop.f32.mrb[0].mxu1 }
 0x23a   :  { %v317_v54 = vadd.f32 %v364_v52, %v316_v53  ;;  %v429_v55 = vpop.f32.mrb[1].mxu1 }
 0x23b   :  { %v319_v56 = vpop.f32.mrb[2].mxu1 }
 0x23c   :  { %v323_v57 = vadd.f32 %v317_v54, %v667_v9  ;;  %322 = vst [vmem:[#allocation9] sm:$0xff] %v317_v54  ;;  %v430_v58 = vpop.f32.mrb[3].mxu1 }
 0x23d   :  { %535 = shalt.err (!%p532_p0)
}
 0x23e   :  { %s536_s23 = scalar_lea.hbm %s712_s7, 128 }
 0x23f   :  { %p537_p1 = scmp.ne.s32.totalorder %s712_s7, %s536_s23  ;;  %p540_p2 = scmp.lt.u32.totalorder %s536_s23, %s712_s7 }
 0x241   :  { %p542_p3 = pnand %p540_p2, %p537_p1 }
 0x243   :  { %545 = shalt.err (!%p542_p3)
}
 0x244   :  { %344 = dma.vmem_to_hbm [thread:$0]  %s342_s20, 128, %s712_s7, [#allocation10]   ;;  %324 = vst [vmem:[#allocation8] sm:$0xff] %v323_v57 }
 0x245   :  { %s546_s29 = scalar_lea.vmem %s332_s21, 128  ;;  %p551_p5 = scmp.lt.s32.totalorder %s332_s21, %s332_s21 }
 0x246   :  { %p547_p4 = scmp.ne.s32.totalorder %s332_s21, %s546_s29  ;;  %p552_p6 = scmp.lt.s32.totalorder %s546_s29, %s546_s29 }
 0x248   :  { %p553_p7 = por %p552_p6, %p551_p5 }
 0x24a   :  { %p554_p8 = pnand %p553_p7, %p547_p4 }
 0x24c   :  { %557 = shalt.err (!%p554_p8)
}
 0x24d   :  { %s558_s9 = scalar_lea.hbm %s711_s6, 128 }
 0x24e   :  { %p559_p9 = scmp.ne.s32.totalorder %s711_s6, %s558_s9  ;;  %p562_p10 = scmp.lt.u32.totalorder %s558_s9, %s711_s6 }
 0x250   :  { %p564_p11 = pnand %p562_p10, %p559_p9 }
 0x252   :  { %567 = shalt.err (!%p564_p11)
}
 0x253   :  { %334 = dma.vmem_to_hbm [thread:$0]  %s332_s21, 128, %s711_s6, [#allocation4]  }
 0x254   :  { %572 = dma.done.wait [#allocation4], 128  }
 0x255   :  { %573 = vsyncadd [#allocation4], 4294967168 }
 0x256   :  { %574 = dma.done.wait [#allocation10], 128  }
 0x257   :  { %575 = vsyncadd [#allocation10], 4294967168 }
 0x258   :  { %351 = vsyncpa [#allocation3], 1 }
 0x259   :  { %352 = vsyncpa [#allocation6], 1 }
 0x25a   :  { %353 = vsyncpa [#allocation4], 1 }
 0x25b   :  { %354 = vsyncpa [#allocation10], 1 }

</bundles_post_ra>
